<compile_context>
chip_gen: v7x
topology: tpu7x:2x2x1
jax: 0.10.0
libtpu: 0.0.40
codegen_flags: <defaults>
</compile_context>

<pallas_src>
import functools

import jax
import jax.numpy as jnp
from jax.experimental import pallas as pl
from jax.experimental.pallas import tpu as pltpu

# --- model hyper-parameters (small, consistent with the module's __init__) ---
NUM_INPUTS   = 64
NUM_HIDDENS1 = 128
NUM_HIDDENS2 = 128
NUM_OUTPUTS  = 32
OUT_PAD      = 128          # lane-dense padded output width (multiple of 128)
DROPOUT1 = 0.2
DROPOUT2 = 0.5
IS_TRAINING = True


def _round_up(n, m):
    return ((n + m - 1) // m) * m


def _mix_u32(x):
    # Stateless integer hash (murmur/wang-style finalizer) on uint32.
    x = (x ^ (x >> 16)) * jnp.uint32(0x7FEB352D)
    x = (x ^ (x >> 15)) * jnp.uint32(0x846CA68B)
    x = x ^ (x >> 16)
    return x


def _keep_mask(shape, row_base_u32, seed_u32, salt, p):
    """Boolean keep-mask with P(keep) = 1 - p, unique per (global row, col, layer)."""
    row = jax.lax.broadcasted_iota(jnp.int32, shape, 0).astype(jnp.uint32)
    col = jax.lax.broadcasted_iota(jnp.int32, shape, 1).astype(jnp.uint32)
    idx = (row_base_u32 + row) * jnp.uint32(shape[1]) + col
    bits = _mix_u32(idx ^ (seed_u32 * jnp.uint32(0x9E3779B9)) ^ jnp.uint32(salt))
    threshold = jnp.uint32(min(int(p * 2.0 ** 32), 2 ** 32 - 1))
    return bits > threshold   # uniform uint32 > p*2^32  <=>  U(0,1) > p


def _dropout(h, keep, p):
    # mask select + 1/(1-p) rescale in a single where (scale folded in-kernel).
    return jnp.where(keep, h * jnp.float32(1.0 / (1.0 - p)), jnp.float32(0.0))


def _mlp_dropout_kernel(tile_b,
                        seed_ref,                       # scalar-prefetch (SMEM)
                        x_ref, w1_ref, b1_ref,
                        w2_ref, b2_ref, w3_ref, b3_ref,  # VMEM inputs
                        o_ref):                          # VMEM output
    seed_u32 = seed_ref[0].astype(jnp.uint32)
    row_base = (pl.program_id(0) * tile_b).astype(jnp.uint32)  # per-tile mask offset

    # layer 1: (tile_b, 64) @ (64, 128), f32 accumulate, ReLU + dropout(0.2)
    h1 = jnp.dot(x_ref[...], w1_ref[...],
                 preferred_element_type=jnp.float32) + b1_ref[...]
    h1 = jnp.maximum(h1, 0.0)
    if IS_TRAINING and DROPOUT1 == 1.0:
        h1 = jnp.zeros_like(h1)
    elif IS_TRAINING and 0.0 < DROPOUT1 < 1.0:
        h1 = _dropout(h1, _keep_mask(h1.shape, row_base, seed_u32, 0x1, DROPOUT1),
                      DROPOUT1)

    # layer 2: bf16 matmul operands, f32 accumulate, ReLU + dropout(0.5)
    h2 = jnp.dot(h1.astype(jnp.bfloat16), w2_ref[...],
                 preferred_element_type=jnp.float32) + b2_ref[...]
    h2 = jnp.maximum(h2, 0.0)
    if IS_TRAINING and DROPOUT2 == 1.0:
        h2 = jnp.zeros_like(h2)
    elif IS_TRAINING and 0.0 < DROPOUT2 < 1.0:
        h2 = _dropout(h2, _keep_mask(h2.shape, row_base, seed_u32, 0x2, DROPOUT2),
                      DROPOUT2)

    # layer 3: lane-dense 128-wide (zero-padded) output store
    o_ref[...] = (jnp.dot(h2.astype(jnp.bfloat16), w3_ref[...],
                          preferred_element_type=jnp.float32) + b3_ref[...])


def net_forward(x, params, seed=0):
    """x: any shape whose element count is a multiple of NUM_INPUTS."""
    w1, b1, w2, b2, w3, b3 = params
    assert x.size % NUM_INPUTS == 0, "input size must be a multiple of NUM_INPUTS"
    x2d = x.reshape((-1, NUM_INPUTS)).astype(jnp.float32)
    batch = x2d.shape[0]

    # Batch tiling: fill the MXU rows (up to 256) and pad batch to a tile multiple.
    tile_b = min(256, _round_up(batch, 8))
    batch_padded = _round_up(batch, tile_b)
    if batch_padded != batch:
        x2d = jnp.pad(x2d, ((0, batch_padded - batch), (0, 0)))

    # bf16 matmul operands (accumulation stays f32 in-kernel); biases stay f32.
    x_bf  = x2d.astype(jnp.bfloat16)
    w1_bf = w1.astype(jnp.bfloat16)
    w2_bf = w2.astype(jnp.bfloat16)
    # pad the last layer to a lane-dense 128-wide output
    w3_p  = jnp.pad(w3.astype(jnp.bfloat16),
                    ((0, 0), (0, OUT_PAD - NUM_OUTPUTS)))
    b1_2d = b1.reshape(1, -1).astype(jnp.float32)
    b2_2d = b2.reshape(1, -1).astype(jnp.float32)
    b3_2d = jnp.pad(b3.reshape(1, -1).astype(jnp.float32),
                    ((0, 0), (0, OUT_PAD - NUM_OUTPUTS)))

    seed_arr = jnp.array([seed], dtype=jnp.int32)

    # Weights/biases: constant block index -> VMEM-resident across grid steps.
    resident = lambda shape: pl.BlockSpec(shape, lambda i, seed_ref: (0, 0))

    out = pl.pallas_call(
        functools.partial(_mlp_dropout_kernel, tile_b),
        out_shape=jax.ShapeDtypeStruct((batch_padded, OUT_PAD), jnp.float32),
        grid_spec=pltpu.PrefetchScalarGridSpec(
            num_scalar_prefetch=1,
            grid=(batch_padded // tile_b,),
            in_specs=[
                pl.BlockSpec((tile_b, NUM_INPUTS), lambda i, seed_ref: (i, 0)),
                resident((NUM_INPUTS, NUM_HIDDENS1)),
                resident((1, NUM_HIDDENS1)),
                resident((NUM_HIDDENS1, NUM_HIDDENS2)),
                resident((1, NUM_HIDDENS2)),
                resident((NUM_HIDDENS2, OUT_PAD)),
                resident((1, OUT_PAD)),
            ],
            out_specs=pl.BlockSpec((tile_b, OUT_PAD), lambda i, seed_ref: (i, 0)),
        ),
        compiler_params=pltpu.CompilerParams(
            dimension_semantics=("parallel",)),
    )(seed_arr, x_bf, w1_bf, b1_2d, w2_bf, b2_2d, w3_p, b3_2d)

    # drop batch padding and the zero-padded output lanes
    return out[:batch, :NUM_OUTPUTS]


def init_params(key):
    """Deterministic init mimicking nn.Linear's U(-1/sqrt(fan_in), 1/sqrt(fan_in))."""
    ks = jax.random.split(key, 6)

    def linear(kw, kb, fan_in, fan_out):
        bound = 1.0 / (fan_in ** 0.5)
        w = jax.random.uniform(kw, (fan_in, fan_out), jnp.float32, -bound, bound)
        b = jax.random.uniform(kb, (fan_out,), jnp.float32, -bound, bound)
        return w, b

    w1, b1 = linear(ks[0], ks[1], NUM_INPUTS, NUM_HIDDENS1)
    w2, b2 = linear(ks[2], ks[3], NUM_HIDDENS1, NUM_HIDDENS2)
    w3, b3 = linear(ks[4], ks[5], NUM_HIDDENS2, NUM_OUTPUTS)
    return (w1, b1, w2, b2, w3, b3)


if __name__ == "__main__":
    key = jax.random.PRNGKey(0)
    k_params, k_x = jax.random.split(key)

    params = init_params(k_params)
    # image-like input that the forward flattens: (batch=8, C=1, 8, 8) -> (8, 64)
    x = jax.random.normal(k_x, (8, 1, 8, 8), dtype=jnp.float32)

    out = net_forward(x, params, seed=0)
    out = jax.block_until_ready(out)

    assert out.shape == (8, NUM_OUTPUTS)
    assert out.dtype == jnp.float32
    assert bool(jnp.all(jnp.isfinite(out)))
    print("KERNEL_OK")
</pallas_src>

<mosaic_0001>
module attributes {stable_mosaic.version = 11 : i64} {
  func.func @_mlp_dropout_kernel(%arg0: i32, %arg1: memref<1xi32, #tpu.memory_space<smem>>, %arg2: memref<8x64xbf16, #tpu.memory_space<vmem>>, %arg3: memref<64x128xbf16, #tpu.memory_space<vmem>>, %arg4: memref<1x128xf32, #tpu.memory_space<vmem>>, %arg5: memref<128x128xbf16, #tpu.memory_space<vmem>>, %arg6: memref<1x128xf32, #tpu.memory_space<vmem>>, %arg7: memref<128x128xbf16, #tpu.memory_space<vmem>>, %arg8: memref<1x128xf32, #tpu.memory_space<vmem>>, %arg9: memref<8x128xf32, #tpu.memory_space<vmem>>) attributes {dimension_semantics = [#tpu.dimension_semantics<parallel>], iteration_bounds = array<i64: 1>, scalar_prefetch = 1 : i64, scratch_operands = 0 : i64, tpu.core_type = #tpu.core_type<tc>, window_params = [{transform_indices = @transform_0, window_bounds = array<i64: 8, 64>}, {pipeline_mode = #tpu.pipeline_mode<synchronous>, transform_indices = @transform_1, window_bounds = array<i64: 64, 128>}, {pipeline_mode = #tpu.pipeline_mode<synchronous>, transform_indices = @transform_2, window_bounds = array<i64: 1, 128>}, {pipeline_mode = #tpu.pipeline_mode<synchronous>, transform_indices = @transform_3, window_bounds = array<i64: 128, 128>}, {pipeline_mode = #tpu.pipeline_mode<synchronous>, transform_indices = @transform_4, window_bounds = array<i64: 1, 128>}, {pipeline_mode = #tpu.pipeline_mode<synchronous>, transform_indices = @transform_5, window_bounds = array<i64: 128, 128>}, {pipeline_mode = #tpu.pipeline_mode<synchronous>, transform_indices = @transform_6, window_bounds = array<i64: 1, 128>}, {transform_indices = @transform_7, window_bounds = array<i64: 8, 128>}]} {
    %c0 = arith.constant 0 : index
    %0 = memref.load %arg1[%c0] : memref<1xi32, #tpu.memory_space<smem>>
    %c8_i32 = arith.constant 8 : i32
    %1 = arith.muli %arg0, %c8_i32 : i32
    %c0_0 = arith.constant 0 : index
    %c0_1 = arith.constant 0 : index
    %2 = vector.load %arg2[%c0_0, %c0_1] : memref<8x64xbf16, #tpu.memory_space<vmem>>, vector<8x64xbf16>
    %c0_2 = arith.constant 0 : index
    %c0_3 = arith.constant 0 : index
    %3 = vector.load %arg3[%c0_2, %c0_3] : memref<64x128xbf16, #tpu.memory_space<vmem>>, vector<64x128xbf16>
    %cst = arith.constant dense<0.000000e+00> : vector<8x128xf32>
    %4 = tpu.matmul %2, %3, %cst {dimension_numbers = #tpu.dot_dimension_numbers<[1], [0], [0], [1], [0, 0, 1, 1], [], []>} : vector<8x64xbf16>, vector<64x128xbf16>, vector<8x128xf32> -> vector<8x128xf32>
    %c0_4 = arith.constant 0 : index
    %c0_5 = arith.constant 0 : index
    %5 = vector.load %arg4[%c0_4, %c0_5] : memref<1x128xf32, #tpu.memory_space<vmem>>, vector<1x128xf32>
    %6 = vector.broadcast %5 : vector<1x128xf32> to vector<8x128xf32>
    %7 = arith.addf %4, %6 : vector<8x128xf32>
    %cst_6 = arith.constant 0.000000e+00 : f32
    %8 = vector.broadcast %cst_6 : f32 to vector<8x128xf32>
    %9 = arith.maximumf %7, %8 : vector<8x128xf32>
    %10 = tpu.iota {dimensions = array<i32: 0>} : vector<8x128xi32>
    %11 = tpu.iota {dimensions = array<i32: 1>} : vector<8x128xi32>
    %12 = vector.broadcast %1 : i32 to vector<8x128xi32>
    %13 = arith.addi %12, %10 : vector<8x128xi32>
    %c128_i32 = arith.constant 128 : i32
    %14 = vector.broadcast %c128_i32 : i32 to vector<8x128xi32>
    %15 = arith.muli %13, %14 : vector<8x128xi32>
    %16 = arith.addi %15, %11 : vector<8x128xi32>
    %c-1640531527_i32 = arith.constant -1640531527 : i32
    %17 = arith.muli %0, %c-1640531527_i32 : i32
    %18 = vector.broadcast %17 : i32 to vector<8x128xi32>
    %19 = arith.xori %16, %18 : vector<8x128xi32>
    %c1_i32 = arith.constant 1 : i32
    %20 = vector.broadcast %c1_i32 : i32 to vector<8x128xi32>
    %21 = arith.xori %19, %20 : vector<8x128xi32>
    %c16_i32 = arith.constant 16 : i32
    %22 = vector.broadcast %c16_i32 : i32 to vector<8x128xi32>
    %23 = arith.shrui %21, %22 : vector<8x128xi32>
    %24 = arith.xori %21, %23 : vector<8x128xi32>
    %c2146121005_i32 = arith.constant 2146121005 : i32
    %25 = vector.broadcast %c2146121005_i32 : i32 to vector<8x128xi32>
    %26 = arith.muli %24, %25 : vector<8x128xi32>
    %c15_i32 = arith.constant 15 : i32
    %27 = vector.broadcast %c15_i32 : i32 to vector<8x128xi32>
    %28 = arith.shrui %26, %27 : vector<8x128xi32>
    %29 = arith.xori %26, %28 : vector<8x128xi32>
    %c-2073254261_i32 = arith.constant -2073254261 : i32
    %30 = vector.broadcast %c-2073254261_i32 : i32 to vector<8x128xi32>
    %31 = arith.muli %29, %30 : vector<8x128xi32>
    %c16_i32_7 = arith.constant 16 : i32
    %32 = vector.broadcast %c16_i32_7 : i32 to vector<8x128xi32>
    %33 = arith.shrui %31, %32 : vector<8x128xi32>
    %34 = arith.xori %31, %33 : vector<8x128xi32>
    %c858993459_i32 = arith.constant 858993459 : i32
    %35 = vector.broadcast %c858993459_i32 : i32 to vector<8x128xi32>
    %36 = arith.cmpi ugt, %34, %35 : vector<8x128xi32>
    %cst_8 = arith.constant 1.250000e+00 : f32
    %37 = vector.broadcast %cst_8 : f32 to vector<8x128xf32>
    %38 = arith.mulf %9, %37 : vector<8x128xf32>
    %cst_9 = arith.constant 0.000000e+00 : f32
    %39 = vector.broadcast %cst_9 : f32 to vector<8x128xf32>
    %40 = arith.select %36, %38, %39 : vector<8x128xi1>, vector<8x128xf32>
    %41 = arith.truncf %40 : vector<8x128xf32> to vector<8x128xbf16>
    %c0_10 = arith.constant 0 : index
    %c0_11 = arith.constant 0 : index
    %42 = vector.load %arg5[%c0_10, %c0_11] : memref<128x128xbf16, #tpu.memory_space<vmem>>, vector<128x128xbf16>
    %cst_12 = arith.constant dense<0.000000e+00> : vector<8x128xf32>
    %43 = tpu.matmul %41, %42, %cst_12 {dimension_numbers = #tpu.dot_dimension_numbers<[1], [0], [0], [1], [0, 0, 1, 1], [], []>} : vector<8x128xbf16>, vector<128x128xbf16>, vector<8x128xf32> -> vector<8x128xf32>
    %c0_13 = arith.constant 0 : index
    %c0_14 = arith.constant 0 : index
    %44 = vector.load %arg6[%c0_13, %c0_14] : memref<1x128xf32, #tpu.memory_space<vmem>>, vector<1x128xf32>
    %45 = vector.broadcast %44 : vector<1x128xf32> to vector<8x128xf32>
    %46 = arith.addf %43, %45 : vector<8x128xf32>
    %cst_15 = arith.constant 0.000000e+00 : f32
    %47 = vector.broadcast %cst_15 : f32 to vector<8x128xf32>
    %48 = arith.maximumf %46, %47 : vector<8x128xf32>
    %49 = tpu.iota {dimensions = array<i32: 0>} : vector<8x128xi32>
    %50 = tpu.iota {dimensions = array<i32: 1>} : vector<8x128xi32>
    %51 = vector.broadcast %1 : i32 to vector<8x128xi32>
    %52 = arith.addi %51, %49 : vector<8x128xi32>
    %c128_i32_16 = arith.constant 128 : i32
    %53 = vector.broadcast %c128_i32_16 : i32 to vector<8x128xi32>
    %54 = arith.muli %52, %53 : vector<8x128xi32>
    %55 = arith.addi %54, %50 : vector<8x128xi32>
    %c-1640531527_i32_17 = arith.constant -1640531527 : i32
    %56 = arith.muli %0, %c-1640531527_i32_17 : i32
    %57 = vector.broadcast %56 : i32 to vector<8x128xi32>
    %58 = arith.xori %55, %57 : vector<8x128xi32>
    %c2_i32 = arith.constant 2 : i32
    %59 = vector.broadcast %c2_i32 : i32 to vector<8x128xi32>
    %60 = arith.xori %58, %59 : vector<8x128xi32>
    %c16_i32_18 = arith.constant 16 : i32
    %61 = vector.broadcast %c16_i32_18 : i32 to vector<8x128xi32>
    %62 = arith.shrui %60, %61 : vector<8x128xi32>
    %63 = arith.xori %60, %62 : vector<8x128xi32>
    %c2146121005_i32_19 = arith.constant 2146121005 : i32
    %64 = vector.broadcast %c2146121005_i32_19 : i32 to vector<8x128xi32>
    %65 = arith.muli %63, %64 : vector<8x128xi32>
    %c15_i32_20 = arith.constant 15 : i32
    %66 = vector.broadcast %c15_i32_20 : i32 to vector<8x128xi32>
    %67 = arith.shrui %65, %66 : vector<8x128xi32>
    %68 = arith.xori %65, %67 : vector<8x128xi32>
    %c-2073254261_i32_21 = arith.constant -2073254261 : i32
    %69 = vector.broadcast %c-2073254261_i32_21 : i32 to vector<8x128xi32>
    %70 = arith.muli %68, %69 : vector<8x128xi32>
    %c16_i32_22 = arith.constant 16 : i32
    %71 = vector.broadcast %c16_i32_22 : i32 to vector<8x128xi32>
    %72 = arith.shrui %70, %71 : vector<8x128xi32>
    %73 = arith.xori %70, %72 : vector<8x128xi32>
    %c-2147483648_i32 = arith.constant -2147483648 : i32
    %74 = vector.broadcast %c-2147483648_i32 : i32 to vector<8x128xi32>
    %75 = arith.cmpi ugt, %73, %74 : vector<8x128xi32>
    %cst_23 = arith.constant 2.000000e+00 : f32
    %76 = vector.broadcast %cst_23 : f32 to vector<8x128xf32>
    %77 = arith.mulf %48, %76 : vector<8x128xf32>
    %cst_24 = arith.constant 0.000000e+00 : f32
    %78 = vector.broadcast %cst_24 : f32 to vector<8x128xf32>
    %79 = arith.select %75, %77, %78 : vector<8x128xi1>, vector<8x128xf32>
    %80 = arith.truncf %79 : vector<8x128xf32> to vector<8x128xbf16>
    %c0_25 = arith.constant 0 : index
    %c0_26 = arith.constant 0 : index
    %81 = vector.load %arg7[%c0_25, %c0_26] : memref<128x128xbf16, #tpu.memory_space<vmem>>, vector<128x128xbf16>
    %cst_27 = arith.constant dense<0.000000e+00> : vector<8x128xf32>
    %82 = tpu.matmul %80, %81, %cst_27 {dimension_numbers = #tpu.dot_dimension_numbers<[1], [0], [0], [1], [0, 0, 1, 1], [], []>} : vector<8x128xbf16>, vector<128x128xbf16>, vector<8x128xf32> -> vector<8x128xf32>
    %c0_28 = arith.constant 0 : index
    %c0_29 = arith.constant 0 : index
    %83 = vector.load %arg8[%c0_28, %c0_29] : memref<1x128xf32, #tpu.memory_space<vmem>>, vector<1x128xf32>
    %84 = vector.broadcast %83 : vector<1x128xf32> to vector<8x128xf32>
    %85 = arith.addf %82, %84 : vector<8x128xf32>
    %c0_30 = arith.constant 0 : index
    %c0_31 = arith.constant 0 : index
    %86 = vector.load %arg9[%c0_30, %c0_31] : memref<8x128xf32, #tpu.memory_space<vmem>>, vector<8x128xf32>
    tpu.vector_store %arg9[%c0_30, %c0_31], %85 {strides = array<i32>} : memref<8x128xf32, #tpu.memory_space<vmem>>, vector<8x128xf32>,
    return
  }
  func.func @transform_0(%arg0: i32, %arg1: memref<1xi32, #tpu.memory_space<smem>>) -> (i32, i32) {
    %c0_i32 = arith.constant 0 : i32
    %c0_i32_0 = arith.constant 0 : i32
    return %arg0, %c0_i32 : i32, i32
  }
  func.func @transform_1(%arg0: i32, %arg1: memref<1xi32, #tpu.memory_space<smem>>) -> (i32, i32) {
    %c0_i32 = arith.constant 0 : i32
    %c0_i32_0 = arith.constant 0 : i32
    %c0_i32_1 = arith.constant 0 : i32
    return %c0_i32, %c0_i32_0 : i32, i32
  }
  func.func @transform_2(%arg0: i32, %arg1: memref<1xi32, #tpu.memory_space<smem>>) -> (i32, i32) {
    %c0_i32 = arith.constant 0 : i32
    %c0_i32_0 = arith.constant 0 : i32
    %c0_i32_1 = arith.constant 0 : i32
    return %c0_i32, %c0_i32_0 : i32, i32
  }
  func.func @transform_3(%arg0: i32, %arg1: memref<1xi32, #tpu.memory_space<smem>>) -> (i32, i32) {
    %c0_i32 = arith.constant 0 : i32
    %c0_i32_0 = arith.constant 0 : i32
    %c0_i32_1 = arith.constant 0 : i32
    return %c0_i32, %c0_i32_0 : i32, i32
  }
  func.func @transform_4(%arg0: i32, %arg1: memref<1xi32, #tpu.memory_space<smem>>) -> (i32, i32) {
    %c0_i32 = arith.constant 0 : i32
    %c0_i32_0 = arith.constant 0 : i32
    %c0_i32_1 = arith.constant 0 : i32
    return %c0_i32, %c0_i32_0 : i32, i32
  }
  func.func @transform_5(%arg0: i32, %arg1: memref<1xi32, #tpu.memory_space<smem>>) -> (i32, i32) {
    %c0_i32 = arith.constant 0 : i32
    %c0_i32_0 = arith.constant 0 : i32
    %c0_i32_1 = arith.constant 0 : i32
    return %c0_i32, %c0_i32_0 : i32, i32
  }
  func.func @transform_6(%arg0: i32, %arg1: memref<1xi32, #tpu.memory_space<smem>>) -> (i32, i32) {
    %c0_i32 = arith.constant 0 : i32
    %c0_i32_0 = arith.constant 0 : i32
    %c0_i32_1 = arith.constant 0 : i32
    return %c0_i32, %c0_i32_0 : i32, i32
  }
  func.func @transform_7(%arg0: i32, %arg1: memref<1xi32, #tpu.memory_space<smem>>) -> (i32, i32) {
    %c0_i32 = arith.constant 0 : i32
    %c0_i32_0 = arith.constant 0 : i32
    return %arg0, %c0_i32 : i32, i32
  }
}

</mosaic_0001>

<bundles_post_ra>
// kernel: tpu_custom_call.1
= control target key start
LH: loop header
LB: loop body
LE: loop exit
PB: predicated region body
PF: predicated region fallthrough
CT: control target
= control target key end

     0   :  { %14 = vsyncpa [#allocation5], 0  ;;  %s861_s0 = inlined_call_operand.<no memory space> [shape: s32[1], index: 0, kind: input, shape index: {}]   ;;  %s862_s1 = inlined_call_operand.hbm [shape: bf16[8,64], index: 1, kind: input, shape index: {}]   ;;  %s863_s2 = inlined_call_operand.hbm [shape: bf16[64,128], index: 2, kind: input, shape index: {}]   ;;  %s864_s3 = inlined_call_operand.vmem [shape: f32[1,128], index: 3, kind: input, shape index: {}]   ;;  %s865_s4 = inlined_call_operand.hbm [shape: bf16[128,128], index: 4, kind: input, shape index: {}]   ;;  %s866_s5 = inlined_call_operand.vmem [shape: f32[1,128], index: 5, kind: input, shape index: {}]   ;;  %s867_s6 = inlined_call_operand.hbm [shape: bf16[128,128], index: 6, kind: input, shape index: {}]   ;;  %s868_s7 = inlined_call_operand.vmem [shape: f32[1,128], index: 7, kind: input, shape index: {}]   ;;  %s869_s8 = inlined_call_operand.hbm [shape: f32[8,128], index: 8, kind: output, shape index: {}]  }
   0x1   :  { %15 = vsyncpa [#allocation8], 0 }
   0x2   :  { %16 = vsyncpa [#allocation11], 0 }
   0x3   :  { %17 = vsyncpa [#allocation6], 0  ;;  %s700_s27 = smov [#allocation7]   ;;  %s582_s9 = scalar_lea.hbm %s863_s2, 512 }
   0x4   :  { %s33_s28 = sshll.u32 %s700_s27, 4  ;;  %p583_p0 = scmp.ne.s32.totalorder %s863_s2, %s582_s9  ;;  %s34_s28 = int_to_ptr.vmem [resolvable:$true] %s33_s28 }
   0x5   :  { %p586_p1 = scmp.lt.u32.totalorder %s582_s9, %s863_s2 }
   0x7   :  { %p588_p2 = pnand %p586_p1, %p583_p0 }
   0x9   :  { %591 = shalt.err (!%p588_p2)
}
   0xa   :  { %s592_s14 = scalar_lea.vmem %s34_s28, 512  ;;  %p597_p4 = scmp.lt.s32.totalorder %s34_s28, %s34_s28 }
   0xb   :  { %p593_p3 = scmp.ne.s32.totalorder %s34_s28, %s592_s14  ;;  %p598_p5 = scmp.lt.s32.totalorder %s592_s14, %s592_s14 }
   0xd   :  { %p599_p6 = por %p598_p5, %p597_p4 }
   0xf   :  { %p600_p7 = pnand %p599_p6, %p593_p3 }
  0x11   :  { %603 = shalt.err (!%p600_p7)
}
  0x12   :  { %s701_s15 = smov 64   ;;  %s702_s16 = smov 4  }
  0x13   :  { %39 = dma.hbm_to_vmem [thread:$0]  %s863_s2, 512, %s34_s28, [#allocation8], %s701_s15, %s701_s15, %s702_s16  }
  0x14   :  { %s703_s19 = smov [#allocation4]   ;;  %s704_s21 = smov [#allocation9]  }
  0x15   :  { %s24_s20 = sshll.u32 %s703_s19, 4  ;;  %s47_s22 = sshll.u32 %s704_s21, 4  ;;  %s25_s20 = int_to_ptr.vmem [resolvable:$true] %s24_s20  ;;  %s48_s22 = int_to_ptr.vmem [resolvable:$true] %s47_s22 }
  0x16   :  { %s604_s25 = scalar_lea.hbm %s862_s1, 64 }
  0x17   :  { %p605_p8 = scmp.ne.s32.totalorder %s862_s1, %s604_s25  ;;  %p608_p9 = scmp.lt.u32.totalorder %s604_s25, %s862_s1 }
  0x19   :  { %p610_p10 = pnand %p608_p9, %p605_p8 }
  0x1b   :  { %613 = shalt.err (!%p610_p10)
}
  0x1c   :  { %s614_s2 = scalar_lea.vmem %s25_s20, 64  ;;  %p619_p12 = scmp.lt.s32.totalorder %s25_s20, %s25_s20 }
  0x1d   :  { %p615_p11 = scmp.ne.s32.totalorder %s25_s20, %s614_s2  ;;  %p620_p13 = scmp.lt.s32.totalorder %s614_s2, %s614_s2 }
  0x1f   :  { %p621_p0 = por %p620_p13, %p619_p12 }
  0x21   :  { %p622_p1 = pnand %p621_p0, %p615_p11 }
  0x23   :  { %625 = shalt.err (!%p622_p1)
}
  0x24   :  { %27 = dma.hbm_to_vmem [thread:$0]  %s862_s1, 64, %s25_s20, [#allocation5]  }
  0x25   :  { %s626_s12 = scalar_lea.hbm %s865_s4, 1024 }
  0x26   :  { %p627_p2 = scmp.ne.s32.totalorder %s865_s4, %s626_s12  ;;  %p630_p3 = scmp.lt.u32.totalorder %s626_s12, %s865_s4 }
  0x28   :  { %p632_p4 = pnand %p630_p3, %p627_p2 }
  0x2a   :  { %635 = shalt.err (!%p632_p4)
}
  0x2b   :  { %s636_s19 = scalar_lea.vmem %s48_s22, 1024  ;;  %p641_p6 = scmp.lt.s32.totalorder %s48_s22, %s48_s22 }
  0x2c   :  { %p637_p5 = scmp.ne.s32.totalorder %s48_s22, %s636_s19  ;;  %p642_p7 = scmp.lt.s32.totalorder %s636_s19, %s636_s19 }
  0x2e   :  { %p643_p8 = por %p642_p7, %p641_p6 }
  0x30   :  { %p644_p9 = pnand %p643_p8, %p637_p5 }
  0x32   :  { %647 = shalt.err (!%p644_p9)
}
  0x33   :  { %53 = dma.hbm_to_vmem [thread:$0]  %s865_s4, 1024, %s48_s22, [#allocation8], %s701_s15, %s701_s15, %s702_s16  }
  0x34   :  { %s705_s21 = smov [#allocation10]   ;;  %s648_s26 = scalar_lea.hbm %s867_s6, 1024 }
  0x35   :  { %s61_s23 = sshll.u32 %s705_s21, 4  ;;  %p649_p10 = scmp.ne.s32.totalorder %s867_s6, %s648_s26  ;;  %s62_s23 = int_to_ptr.vmem [resolvable:$true] %s61_s23 }
  0x36   :  { %p652_p11 = scmp.lt.u32.totalorder %s648_s26, %s867_s6 }
  0x38   :  { %p654_p12 = pnand %p652_p11, %p649_p10 }
  0x3a   :  { %657 = shalt.err (!%p654_p12)
}
  0x3b   :  { %s658_s28 = scalar_lea.vmem %s62_s23, 1024  ;;  %p663_p0 = scmp.lt.s32.totalorder %s62_s23, %s62_s23 }
  0x3c   :  { %p659_p13 = scmp.ne.s32.totalorder %s62_s23, %s658_s28  ;;  %p664_p1 = scmp.lt.s32.totalorder %s658_s28, %s658_s28 }
  0x3e   :  { %p665_p2 = por %p664_p1, %p663_p0 }
  0x40   :  { %p666_p3 = pnand %p665_p2, %p659_p13 }
  0x42   :  { %669 = shalt.err (!%p666_p3)
}
  0x43   :  { %67 = dma.hbm_to_vmem [thread:$0]  %s867_s6, 1024, %s62_s23, [#allocation11], %s701_s15, %s701_s15, %s702_s16  }
  0x44   :  { %692 = dma.done.wait [#allocation5], 64  }
  0x45   :  { %693 = vsyncadd [#allocation5], 4294967232 }
  0x46   :  { %694 = dma.done.wait [#allocation8], 1536  }
  0x47   :  { %695 = vsyncadd [#allocation8], 4294965760 }
  0x48   :  { %696 = dma.done.wait [#allocation11], 1024  }
  0x49   :  { %697 = vsyncadd [#allocation11], 4294966272  ;;  %v706_v0 = vmov 0.0   ;;  %vm707_vm0 = vmmov 0   ;;  %v562_v1 = vld [vmem:[#allocation7] sm:$0xff]   ;;  %v563_v2 = vld [vmem:[#allocation7 + $0x8] sm:$0xff]   ;;  %v170_v20 = vlaneseq }
  0x4a   :  { %501 = vmatprep.subr.bf16.mxu0 %v706_v0  ;;  %509 = vmatprep.mubr.msk.bf16.mxu0 %vm707_vm0, %v706_v0  ;;  %v566_v3 = vld [vmem:[#allocation9] sm:$0xff]   ;;  %v564_v4 = vld [vmem:[#allocation7 + $0x10] sm:$0xff]   ;;  %v567_v5 = vld [vmem:[#allocation9 + $0x8] sm:$0xff]   ;;  %vm125_vm1 = vcmask 523264   ;;  %s178_s16 = smul.u32 2654435769, %s861_s0 }
  0x4b   :  { %513 = vmatprep.subr.bf16.mxu1 %v706_v0  ;;  %529 = vmatprep.mubr.msk.bf16.mxu1 %vm707_vm0, %v706_v0  ;;  %v565_v6 = vld [vmem:[#allocation7 + $0x18] sm:$0xff]   ;;  %v568_v7 = vld [vmem:[#allocation9 + $0x10] sm:$0xff]   ;;  %v570_v10 = vld [vmem:[#allocation9 + $0x20] sm:$0xff]   ;;  %v171_v21 = vshrl.u32 %v170_v20, 7  ;;  %v173_v22 = vand.u32 127, %v170_v20  ;;  %s708_s13 = smov [#allocation12]  }
  0x4c   :  { %502 = vmatpush3.bf16.msra.mxu0 %v562_v1  ;;  %514 = vmatpush3.bf16.msra.mxu1 %v566_v3  ;;  %v85_v8 = vld [vmem:[#allocation4] sm:$0xf]  ;;  %v571_v11 = vld [vmem:[#allocation9 + $0x28] sm:$0xff]   ;;  %v572_v12 = vld [vmem:[#allocation9 + $0x30] sm:$0xff]   ;;  %v179_v25 = vstv %s178_s16  ;;  %s437_s14 = sshll.u32 %s708_s13, 4  ;;  %s438_s14 = int_to_ptr.vmem [resolvable:$true] %s437_s14 }
  0x4d   :  { %503 = vmatprep.subr.bf16.mxu0 %v706_v0  ;;  %515 = vmatprep.subr.bf16.mxu1 %v706_v0  ;;  %v569_v9 = vld [vmem:[#allocation9 + $0x18] sm:$0xff]   ;;  %v574_v14 = vld [vmem:[#allocation10] sm:$0xff]   ;;  %v575_v15 = vld [vmem:[#allocation10 + $0x8] sm:$0xff]   ;;  %v176_v23 = vmul.u32 128, %v171_v21  ;;  %p675_p5 = scmp.lt.s32.totalorder %s438_s14, %s438_s14 }
  0x4e   :  { %v573_v13 = vld [vmem:[#allocation9 + $0x38] sm:$0xff]   ;;  %v576_v16 = vld [vmem:[#allocation10 + $0x10] sm:$0xff]   ;;  %v578_v18 = vld [vmem:[#allocation10 + $0x20] sm:$0xff]  }
  0x4f   :  { %v577_v17 = vld [vmem:[#allocation10 + $0x18] sm:$0xff]   ;;  %v579_v19 = vld [vmem:[#allocation10 + $0x28] sm:$0xff]   ;;  %v177_v24 = vadd.s32 %v176_v23, %v173_v22  ;;  %v580_v45 = vld [vmem:[#allocation10 + $0x30] sm:$0xff]  }
  0x50   :  { %504 = vmatpush3.bf16.msra.mxu0 %v563_v2  ;;  %516 = vmatpush3.bf16.msra.mxu1 %v567_v5  ;;  %v448_v35 = vld [vmem:[%s864_s3] ss:$0 sm:$0xff] }
  0x51   :  { %505 = vmatprep.subr.bf16.mxu0 %v706_v0  ;;  %517 = vmatprep.subr.bf16.mxu1 %v706_v0  ;;  %v180_v26 = vxor.u32 %v179_v25, %v177_v24  ;;  %v581_v46 = vld [vmem:[#allocation10 + $0x38] sm:$0xff]  }
  0x52   :  { %v454_v55 = vld [vmem:[%s866_s5] ss:$0 sm:$0xff]  ;;  %s670_s5 = scalar_lea.vmem %s438_s14, 128 }
  0x53   :  { %v181_v27 = vxor.u32 1, %v180_v26  ;;  %v306_v47 = vxor.u32 2, %v180_v26  ;;  %v466_v1 = vld [vmem:[%s868_s7] ss:$0 sm:$0xff]  ;;  %p671_p4 = scmp.ne.s32.totalorder %s438_s14, %s670_s5  ;;  %p676_p6 = scmp.lt.s32.totalorder %s670_s5, %s670_s5 }
  0x54   :  { %506 = vmatpush3.bf16.msra.mxu0 %v564_v4  ;;  %518 = vmatpush3.bf16.msra.mxu1 %v568_v7 }
  0x55   :  { %507 = vmatprep.subr.bf16.mxu0 %v706_v0  ;;  %519 = vmatprep.subr.bf16.mxu1 %v706_v0  ;;  %v182_v28 = vshrl.u32 %v181_v27, 16  ;;  %v307_v48 = vshrl.u32 %v306_v47, 16  ;;  %p677_p7 = por %p676_p6, %p675_p5 }
  0x57   :  { %v183_v29 = vxor.u32 %v182_v28, %v181_v27  ;;  %v308_v49 = vxor.u32 %v307_v48, %v306_v47  ;;  %p678_p8 = pnand %p677_p7, %p671_p4 }
  0x58   :  { %508 = vmatpush3.bf16.msra.mxu0 %v565_v6  ;;  %520 = vmatpush3.bf16.msra.mxu1 %v569_v9 }
  0x59   :  { %533 = vmatprep.subr.bf16.mxu0 %v706_v0  ;;  %521 = vmatprep.subr.bf16.mxu1 %v706_v0  ;;  %v184_v30 = vmul.u32 2146121005, %v183_v29  ;;  %v309_v50 = vmul.u32 2146121005, %v308_v49 }
  0x5b   :  { %510 = vmatmul.mubr.msk.bf16.vlgmr.msra.gmra.mrb[0].mxu0 %vm125_vm1, %v85_v8  ;;  %v185_v31 = vshrl.u32 %v184_v30, 15  ;;  %v310_v51 = vshrl.u32 %v309_v50, 15 }
  0x5c   :  { %549 = vmatprep.mubr.msk.bf16.mxu0 %vm707_vm0, %v706_v0  ;;  %522 = vmatpush3.bf16.msra.mxu1 %v570_v10 }
  0x5d   :  { %523 = vmatprep.subr.bf16.mxu1 %v706_v0  ;;  %534 = vmatpush3.bf16.msra.mxu0 %v574_v14  ;;  %v186_v32 = vxor.u32 %v185_v31, %v184_v30  ;;  %v311_v52 = vxor.u32 %v310_v51, %v309_v50 }
  0x5e   :  { %535 = vmatprep.subr.bf16.mxu0 %v706_v0 }
  0x5f   :  { %v187_v33 = vmul.u32 2221713035, %v186_v32  ;;  %v312_v53 = vmul.u32 2221713035, %v311_v52 }
  0x60   :  { %524 = vmatpush3.bf16.msra.mxu1 %v571_v11 }
  0x61   :  { %525 = vmatprep.subr.bf16.mxu1 %v706_v0  ;;  %536 = vmatpush3.bf16.msra.mxu0 %v575_v15  ;;  %v188_v34 = vshrl.u32 %v187_v33, 16  ;;  %v313_v54 = vshrl.u32 %v312_v53, 16 }
  0x62   :  { %537 = vmatprep.subr.bf16.mxu0 %v706_v0 }
  0x63   :  { %v189_v36 = vxor.u32 %v188_v34, %v187_v33  ;;  %v314_v56 = vxor.u32 %v313_v54, %v312_v53 }
  0x64   :  { %526 = vmatpush3.bf16.msra.mxu1 %v572_v12 }
  0x65   :  { %527 = vmatprep.subr.bf16.mxu1 %v706_v0  ;;  %538 = vmatpush3.bf16.msra.mxu0 %v576_v16  ;;  %vm190_vm2 = vcmp.gt.u32.totalorder %v189_v36, 858993459  ;;  %vm315_vm4 = vcmp.gt.u32.totalorder %v314_v56, 2147483648 }
  0x66   :  { %539 = vmatprep.subr.bf16.mxu0 %v706_v0  ;;  %vm463_vm3 = vmpackc.low %vm190_vm2, %vm190_vm2 }
  0x67   :  { %vm475_vm5 = vmpackc.low %vm315_vm4, %vm315_vm4 }
  0x68   :  { %528 = vmatpush3.bf16.msra.mxu1 %v573_v13 }
  0x69   :  { %540 = vmatpush3.bf16.msra.mxu0 %v577_v17 }
  0x6a   :  { %541 = vmatprep.subr.bf16.mxu0 %v706_v0 }
  0x6d   :  { %542 = vmatpush3.bf16.msra.mxu0 %v578_v18 }
  0x6e   :  { %543 = vmatprep.subr.bf16.mxu0 %v706_v0 }
  0x71   :  { %544 = vmatpush3.bf16.msra.mxu0 %v579_v19 }
  0x72   :  { %545 = vmatprep.subr.bf16.mxu0 %v706_v0 }
  0x75   :  { %546 = vmatpush3.bf16.msra.mxu0 %v580_v45 }
  0x76   :  { %547 = vmatprep.subr.bf16.mxu0 %v706_v0 }
  0x79   :  { %548 = vmatpush3.bf16.msra.mxu0 %v581_v46 }
 0x12e   :  { %v163_v37 = vpop.f32.mrb[0].mxu0 }
 0x12f   :  { %v164_v38 = vadd.f32 %v448_v35, %v163_v37  ;;  %v511_v39 = vpop.f32.mrb[1].mxu0 }
 0x130   :  { %v166_v40 = vpop.f32.mrb[2].mxu0 }
 0x131   :  { %v169_v41 = vmax.f32 %v164_v38, 0.0  ;;  %v512_v42 = vpop.f32.mrb[3].mxu0 }
 0x133   :  { %v191_v43 = vmul.f32 1.25, %v169_v41 }
 0x135   :  { %v464_v44 = vpack.c.bf16 %v191_v43, %v191_v43 }
 0x137   :  { %530 = vmatmul.mubr.msk.bf16.vlgmr.msra.gmra.mrb[0].mxu1 %vm463_vm3, %v464_v44 }
 0x20a   :  { %v299_v57 = vpop.f32.mrb[0].mxu1 }
 0x20b   :  { %v300_v58 = vadd.f32 %v454_v55, %v299_v57  ;;  %v531_v59 = vpop.f32.mrb[1].mxu1 }
 0x20c   :  { %v302_v60 = vpop.f32.mrb[2].mxu1 }
 0x20d   :  { %v305_v61 = vmax.f32 %v300_v58, 0.0  ;;  %v532_v62 = vpop.f32.mrb[3].mxu1 }
 0x20f   :  { %v316_v63 = vmul.f32 2.0, %v305_v61 }
 0x211   :  { %v476_v0 = vpack.c.bf16 %v316_v63, %v316_v63 }
 0x213   :  { %550 = vmatmul.mubr.msk.bf16.vlgmr.msra.gmra.mrb[4].mxu0 %vm475_vm5, %v476_v0 }
 0x2e6   :  { %v424_v2 = vpop.f32.mrb[4].mxu0 }
 0x2e7   :  { %v425_v3 = vadd.f32 %v466_v1, %v424_v2  ;;  %v551_v4 = vpop.f32.mrb[5].mxu0 }
 0x2e8   :  { %v427_v5 = vpop.f32.mrb[6].mxu0 }
 0x2e9   :  { %430 = vst [vmem:[#allocation12] sm:$0xff] %v425_v3  ;;  %v552_v6 = vpop.f32.mrb[7].mxu0 }
 0x2ea   :  { %681 = shalt.err (!%p678_p8)
}
 0x2eb   :  { %s682_s7 = scalar_lea.hbm %s869_s8, 128 }
 0x2ec   :  { %p683_p9 = scmp.ne.s32.totalorder %s869_s8, %s682_s7  ;;  %p686_p10 = scmp.lt.u32.totalorder %s682_s7, %s869_s8 }
 0x2ee   :  { %p688_p11 = pnand %p686_p10, %p683_p9 }
 0x2f0   :  { %691 = shalt.err (!%p688_p11)
}
 0x2f1   :  { %440 = dma.vmem_to_hbm [thread:$0]  %s438_s14, 128, %s869_s8, [#allocation6]  }
 0x2f2   :  { %698 = dma.done.wait [#allocation6], 128  }
 0x2f3   :  { %699 = vsyncadd [#allocation6], 4294967168 }
 0x2f4   :  { %444 = vsyncpa [#allocation5], 1 }
 0x2f5   :  { %445 = vsyncpa [#allocation8], 1 }
 0x2f6   :  { %446 = vsyncpa [#allocation11], 1 }
 0x2f7   :  { %447 = vsyncpa [#allocation6], 1 }

</bundles_post_ra>
